<compile_context>
chip_gen: v7x
topology: tpu7x:2x2x1
jax: 0.10.0
libtpu: 0.0.40
codegen_flags: <defaults>
</compile_context>

<pallas_src>
import jax
import jax.numpy as jnp
from jax import lax
from jax.experimental import pallas as pl
from jax.experimental.pallas import tpu as pltpu

EPS = 1e-5
_LANES = 128                      # vreg lane width
_FALLBACK_ELEMS = 32 * 1024       # below this, let XLA fuse the LayerNorm


def _round_up(x, m):
    return -(-x // m) * m


def _make_ln_kernel(inv_c, eps):
    # Segment matrices are tiny 0/1 (or weight-folded) matrices; HIGHEST keeps
    # the f32 sums exact on the MXU at negligible cost.
    prec = lax.Precision.HIGHEST

    def kernel(x_ref, seg_ref, segt_ref, segtw_ref, b_ref, o_ref):
        x = x_ref[...].astype(jnp.float32)        # (TM, W) lane-dense tile
        seg = seg_ref[...]                        # (W, P) 0/1: lane -> row group
        segt = segt_ref[...]                      # (P, W) 0/1 transpose
        segtw = segtw_ref[...]                    # (P, W) transpose * weight

        # Segmented row sums on the otherwise-idle MXU (P = rows packed per
        # 128-lane row; P == 1 when C >= 128).
        mean = jnp.dot(x, seg, preferred_element_type=jnp.float32, precision=prec) * inv_c
        mean_b = jnp.dot(mean, segt, preferred_element_type=jnp.float32, precision=prec)
        xc = x - mean_b                           # centered (two-pass variance)
        var = jnp.dot(xc * xc, seg, preferred_element_type=jnp.float32, precision=prec) * inv_c
        inv = lax.rsqrt(jnp.maximum(var, 0.0) + eps)
        # Affine weight folded into the broadcast-back: scale_b[r,l] = inv[r,g(l)] * w[l]
        scale_b = jnp.dot(inv, segtw, preferred_element_type=jnp.float32, precision=prec)
        o_ref[...] = (xc * scale_b + b_ref[...]).astype(o_ref.dtype)

    return kernel


def layernorm_0(x_0, weight, bias, batch=None, piece=None, *, eps=EPS, force_pallas=False):
    """type='0' path of LayerNorm_0: nn.LayerNorm(C) over the last dim of [N, C]."""
    N, C = x_0.shape
    out_dtype = x_0.dtype

    # Small/medium inputs: pallas_call launch + DMA setup dwarfs the < 1 us of
    # HBM traffic; let XLA fuse the LayerNorm into surrounding ops instead.
    if not force_pallas and N * C <= _FALLBACK_ELEMS:
        x32 = x_0.astype(jnp.float32)
        mean = jnp.mean(x32, axis=-1, keepdims=True)
        var = jnp.mean((x32 - mean) ** 2, axis=-1, keepdims=True)
        y = (x32 - mean) * lax.rsqrt(var + eps)
        return (y * weight.astype(jnp.float32) + bias.astype(jnp.float32)).astype(out_dtype)

    # ---- lane-dense packing: `pack` logical rows per 128-lane vreg row ----
    # TODO(synk): C < 128 that does not divide 128 (e.g. 48, 96) still runs at
    #             pack=1 (lane-sparse loads/stores); channel zero-padding not implemented.
    pack = _LANES // C if (0 < C < _LANES and _LANES % C == 0) else 1
    W = C * pack

    # Pad N only to a multiple of `pack` (needed for the free row-major reshape);
    # the grid's last block is ragged and Pallas masks its out-of-bounds writes,
    # so no padding up to grid*tile and no extra HBM copies for aligned N.
    n_pad = _round_up(N, pack)
    if n_pad == N:
        x_p = x_0.reshape(n_pad // pack, W)       # free metadata reshape
    else:
        x_p = jnp.pad(x_0, ((0, n_pad - N), (0, 0))).reshape(n_pad // pack, W)
    packed_rows = n_pad // pack

    itemsize = jnp.dtype(out_dtype).itemsize
    sublane = {4: 8, 2: 16, 1: 32}.get(itemsize, 8)

    # ---- VMEM-aware tile sizing (counts the in-kernel f32 working set too) ----
    try:
        phys_vmem = int(pltpu.get_tpu_info().vmem_capacity_bytes)
    except Exception:
        phys_vmem = 64 * 1024 * 1024              # v7x worst case
    phys_vmem = max(phys_vmem, 32 * 1024 * 1024)
    vmem_limit = min((phys_vmem * 3) // 4, 96 * 1024 * 1024)   # ~48 MiB on v7x, 96 MiB on v5e/v6e
    # Per packed row: double-buffered in + out at itemsize plus ~6 f32 temps
    # (x_f32, xc, xc*xc, mean_b, scale_b, y).
    bytes_per_row = W * (4 * itemsize + 24)
    rows_by_vmem = max(sublane,
                       ((vmem_limit - (4 << 20)) // bytes_per_row) // sublane * sublane)
    max_tile = min(8192, rows_by_vmem)

    # ---- grid shaping: even step count >= 4 when there is enough work, so the
    #      two v7x TensorCores stay balanced and the DMA pipeline overlaps.
    if packed_rows <= max_tile:
        if packed_rows >= 4 * sublane:
            steps = 4
        elif packed_rows >= 2 * sublane:
            steps = 2
        else:
            steps = 1
    else:
        steps = pl.cdiv(packed_rows, max_tile)
        if steps % 2:
            steps += 1
    tile_rows = max(sublane, _round_up(pl.cdiv(packed_rows, steps), sublane))
    grid_m = pl.cdiv(packed_rows, tile_rows)

    # Resident (1-block) operands: 0/1 segment matrices mapping lane -> logical
    # row group, weight-folded transpose, and bias in the packed lane layout.
    w_p = jnp.tile(weight.astype(jnp.float32).reshape(1, C), (1, pack))   # (1, W)
    b_p = jnp.tile(bias.astype(jnp.float32).reshape(1, C), (1, pack))     # (1, W)
    seg = (jnp.arange(W)[:, None] // C == jnp.arange(pack)[None, :]).astype(jnp.float32)  # (W, P)
    segt = seg.T                                                          # (P, W)
    segtw = segt * w_p                                                    # (P, W)

    out = pl.pallas_call(
        _make_ln_kernel(1.0 / C, eps),
        out_shape=jax.ShapeDtypeStruct((packed_rows, W), out_dtype),
        grid_spec=pltpu.PrefetchScalarGridSpec(
            num_scalar_prefetch=0,
            grid=(grid_m,),
            in_specs=[
                pl.BlockSpec((tile_rows, W), lambda i: (i, 0)),
                pl.BlockSpec((W, pack), lambda i: (0, 0)),
                pl.BlockSpec((pack, W), lambda i: (0, 0)),
                pl.BlockSpec((pack, W), lambda i: (0, 0)),
                pl.BlockSpec((1, W), lambda i: (0, 0)),
            ],
            out_specs=pl.BlockSpec((tile_rows, W), lambda i: (i, 0)),
        ),
        compiler_params=pltpu.CompilerParams(
            dimension_semantics=("parallel",),
            vmem_limit_bytes=vmem_limit,
        ),
    )(x_p, seg, segt, segtw, b_p)

    out = out.reshape(n_pad, C)
    return out if n_pad == N else out[:N]


if __name__ == "__main__":
    key = jax.random.PRNGKey(0)
    kx, kw, kb, kx2, kx3 = jax.random.split(key, 5)

    def ref_ln(x, w, b, eps=EPS):
        x32 = x.astype(jnp.float32)
        mean = jnp.mean(x32, axis=-1, keepdims=True)
        var = jnp.mean((x32 - mean) ** 2, axis=-1, keepdims=True)
        return ((x32 - mean) / jnp.sqrt(var + eps) * w[None, :] + b[None, :]).astype(x.dtype)

    # ---- case 1: C=32 (pack=4), N=18 not a multiple of pack -> pad + ragged block
    C = 32
    weight = jnp.ones((C,), jnp.float32) + 0.1 * jax.random.normal(kw, (C,), jnp.float32)
    bias = 0.1 * jax.random.normal(kb, (C,), jnp.float32)
    N = 18
    x_0 = jax.random.normal(kx, (N, C), dtype=jnp.float32)
    batch = jnp.zeros((N,), jnp.int32)   # unused for type='0'
    piece = jnp.zeros((N,), jnp.int32)   # unused for type='0'
    out = jax.block_until_ready(
        layernorm_0(x_0, weight, bias, batch, piece, force_pallas=True))
    assert out.shape == (N, C)
    assert jnp.allclose(out, ref_ln(x_0, weight, bias), atol=2e-5, rtol=2e-5), "mismatch (small)"

    # ---- case 2: multi-step ragged grid, aligned N (no pad/slice copies),
    #              nonzero mean exercises the centered two-pass statistics.
    N2 = 2048
    x_big = jax.random.normal(kx2, (N2, C), dtype=jnp.float32) + 3.0
    out_big = jax.block_until_ready(layernorm_0(x_big, weight, bias))
    assert jnp.allclose(out_big, ref_ln(x_big, weight, bias), atol=2e-5, rtol=2e-5), "mismatch (large)"

    # ---- case 3: C=128 (pack=1) path, single ragged block
    C3 = 128
    w3 = jnp.ones((C3,), jnp.float32)
    b3 = jnp.zeros((C3,), jnp.float32)
    x3 = jax.random.normal(kx3, (12, C3), dtype=jnp.float32)
    out3 = jax.block_until_ready(layernorm_0(x3, w3, b3, force_pallas=True))
    assert jnp.allclose(out3, ref_ln(x3, w3, b3), atol=2e-5, rtol=2e-5), "mismatch (C=128)"

    print("KERNEL_OK")
</pallas_src>

<mosaic_0001>
module attributes {stable_mosaic.version = 11 : i64} {
  func.func @kernel(%arg0: i32, %arg1: memref<8x128xf32, #tpu.memory_space<vmem>>, %arg2: memref<128x4xf32, #tpu.memory_space<vmem>>, %arg3: memref<4x128xf32, #tpu.memory_space<vmem>>, %arg4: memref<4x128xf32, #tpu.memory_space<vmem>>, %arg5: memref<1x128xf32, #tpu.memory_space<vmem>>, %arg6: memref<8x128xf32, #tpu.memory_space<vmem>>) attributes {dimension_semantics = [#tpu.dimension_semantics<parallel>], iteration_bounds = array<i64: 1>, scalar_prefetch = 0 : i64, scratch_operands = 0 : i64, tpu.core_type = #tpu.core_type<tc>, window_params = [{transform_indices = @transform_0, window_bounds = array<i64: 8, 128>}, {pipeline_mode = #tpu.pipeline_mode<synchronous>, transform_indices = @transform_1, window_bounds = array<i64: 128, 4>}, {pipeline_mode = #tpu.pipeline_mode<synchronous>, transform_indices = @transform_2, window_bounds = array<i64: 4, 128>}, {pipeline_mode = #tpu.pipeline_mode<synchronous>, transform_indices = @transform_3, window_bounds = array<i64: 4, 128>}, {pipeline_mode = #tpu.pipeline_mode<synchronous>, transform_indices = @transform_4, window_bounds = array<i64: 1, 128>}, {transform_indices = @transform_5, window_bounds = array<i64: 8, 128>}]} {
    %c0 = arith.constant 0 : index
    %c0_0 = arith.constant 0 : index
    %0 = vector.load %arg1[%c0, %c0_0] : memref<8x128xf32, #tpu.memory_space<vmem>>, vector<8x128xf32>
    %c0_1 = arith.constant 0 : index
    %c0_2 = arith.constant 0 : index
    %1 = vector.load %arg2[%c0_1, %c0_2] : memref<128x4xf32, #tpu.memory_space<vmem>>, vector<128x4xf32>
    %c0_3 = arith.constant 0 : index
    %c0_4 = arith.constant 0 : index
    %2 = vector.load %arg3[%c0_3, %c0_4] : memref<4x128xf32, #tpu.memory_space<vmem>>, vector<4x128xf32>
    %c0_5 = arith.constant 0 : index
    %c0_6 = arith.constant 0 : index
    %3 = vector.load %arg4[%c0_5, %c0_6] : memref<4x128xf32, #tpu.memory_space<vmem>>, vector<4x128xf32>
    %cst = arith.constant dense<0.000000e+00> : vector<8x4xf32>
    %4 = tpu.matmul %0, %1, %cst {dimension_numbers = #tpu.dot_dimension_numbers<[1], [0], [0], [1], [0, 0, 1, 1], [], []>, precision = #tpu.contract_precision<fp32>} : vector<8x128xf32>, vector<128x4xf32>, vector<8x4xf32> -> vector<8x4xf32>
    %cst_7 = arith.constant 3.125000e-02 : f32
    %5 = vector.broadcast %cst_7 : f32 to vector<8x4xf32>
    %6 = arith.mulf %4, %5 : vector<8x4xf32>
    %cst_8 = arith.constant dense<0.000000e+00> : vector<8x128xf32>
    %7 = tpu.matmul %6, %2, %cst_8 {dimension_numbers = #tpu.dot_dimension_numbers<[1], [0], [0], [1], [0, 0, 1, 1], [], []>, precision = #tpu.contract_precision<fp32>} : vector<8x4xf32>, vector<4x128xf32>, vector<8x128xf32> -> vector<8x128xf32>
    %8 = arith.subf %0, %7 : vector<8x128xf32>
    %9 = arith.mulf %8, %8 : vector<8x128xf32>
    %cst_9 = arith.constant dense<0.000000e+00> : vector<8x4xf32>
    %10 = tpu.matmul %9, %1, %cst_9 {dimension_numbers = #tpu.dot_dimension_numbers<[1], [0], [0], [1], [0, 0, 1, 1], [], []>, precision = #tpu.contract_precision<fp32>} : vector<8x128xf32>, vector<128x4xf32>, vector<8x4xf32> -> vector<8x4xf32>
    %cst_10 = arith.constant 3.125000e-02 : f32
    %11 = vector.broadcast %cst_10 : f32 to vector<8x4xf32>
    %12 = arith.mulf %10, %11 : vector<8x4xf32>
    %cst_11 = arith.constant 0.000000e+00 : f32
    %13 = vector.broadcast %cst_11 : f32 to vector<8x4xf32>
    %14 = arith.maximumf %12, %13 : vector<8x4xf32>
    %cst_12 = arith.constant 9.99999974E-6 : f32
    %15 = vector.broadcast %cst_12 : f32 to vector<8x4xf32>
    %16 = arith.addf %14, %15 : vector<8x4xf32>
    %17 = math.rsqrt %16 : vector<8x4xf32>
    %cst_13 = arith.constant dense<0.000000e+00> : vector<8x128xf32>
    %18 = tpu.matmul %17, %3, %cst_13 {dimension_numbers = #tpu.dot_dimension_numbers<[1], [0], [0], [1], [0, 0, 1, 1], [], []>, precision = #tpu.contract_precision<fp32>} : vector<8x4xf32>, vector<4x128xf32>, vector<8x128xf32> -> vector<8x128xf32>
    %19 = arith.mulf %8, %18 : vector<8x128xf32>
    %c0_14 = arith.constant 0 : index
    %c0_15 = arith.constant 0 : index
    %20 = vector.load %arg5[%c0_14, %c0_15] : memref<1x128xf32, #tpu.memory_space<vmem>>, vector<1x128xf32>
    %21 = vector.broadcast %20 : vector<1x128xf32> to vector<8x128xf32>
    %22 = arith.addf %19, %21 : vector<8x128xf32>
    %c0_16 = arith.constant 0 : index
    %c0_17 = arith.constant 0 : index
    %23 = vector.load %arg6[%c0_16, %c0_17] : memref<8x128xf32, #tpu.memory_space<vmem>>, vector<8x128xf32>
    tpu.vector_store %arg6[%c0_16, %c0_17], %22 {strides = array<i32>} : memref<8x128xf32, #tpu.memory_space<vmem>>, vector<8x128xf32>,
    return
  }
  func.func @transform_0(%arg0: i32) -> (i32, i32) {
    %c0_i32 = arith.constant 0 : i32
    %c0_i32_0 = arith.constant 0 : i32
    return %arg0, %c0_i32 : i32, i32
  }
  func.func @transform_1(%arg0: i32) -> (i32, i32) {
    %c0_i32 = arith.constant 0 : i32
    %c0_i32_0 = arith.constant 0 : i32
    %c0_i32_1 = arith.constant 0 : i32
    return %c0_i32, %c0_i32_0 : i32, i32
  }
  func.func @transform_2(%arg0: i32) -> (i32, i32) {
    %c0_i32 = arith.constant 0 : i32
    %c0_i32_0 = arith.constant 0 : i32
    %c0_i32_1 = arith.constant 0 : i32
    return %c0_i32, %c0_i32_0 : i32, i32
  }
  func.func @transform_3(%arg0: i32) -> (i32, i32) {
    %c0_i32 = arith.constant 0 : i32
    %c0_i32_0 = arith.constant 0 : i32
    %c0_i32_1 = arith.constant 0 : i32
    return %c0_i32, %c0_i32_0 : i32, i32
  }
  func.func @transform_4(%arg0: i32) -> (i32, i32) {
    %c0_i32 = arith.constant 0 : i32
    %c0_i32_0 = arith.constant 0 : i32
    %c0_i32_1 = arith.constant 0 : i32
    return %c0_i32, %c0_i32_0 : i32, i32
  }
  func.func @transform_5(%arg0: i32) -> (i32, i32) {
    %c0_i32 = arith.constant 0 : i32
    %c0_i32_0 = arith.constant 0 : i32
    return %arg0, %c0_i32 : i32, i32
  }
}

</mosaic_0001>

<bundles_post_ra>
// kernel: tpu_custom_call.1
= control target key start
LH: loop header
LB: loop body
LE: loop exit
PB: predicated region body
PF: predicated region fallthrough
CT: control target
= control target key end

     0   :  { %v3326_v3 = vmov 0.0|0.0   ;;  %vm3327_vm0 = vmmov 0   ;;  %v3328_v8 = vmov 0.0   ;;  %s3863_s0 = inlined_call_operand.vmem [shape: f32[5,128], index: 0, kind: input, shape index: {}]   ;;  %s3864_s1 = inlined_call_operand.vmem [shape: f32[128,4], index: 1, kind: input, shape index: {}]   ;;  %s3865_s2 = inlined_call_operand.vmem [shape: f32[4,128], index: 2, kind: input, shape index: {}]   ;;  %s3866_s3 = inlined_call_operand.vmem [shape: f32[4,128], index: 3, kind: input, shape index: {}]   ;;  %s3867_s4 = inlined_call_operand.vmem [shape: f32[1,128], index: 4, kind: input, shape index: {}]   ;;  %s3868_s5 = inlined_call_operand.hbm [shape: f32[5,128], index: 5, kind: output, shape index: {}]  }
   0x1   :  { %v22_v0 = vld [vmem:[%s3864_s1] sm:$0xff]  ;;  %v23_v1 = vld [vmem:[%s3864_s1 + $0x8] sm:$0xff]  ;;  %v24_v2 = vld [vmem:[%s3864_s1 + $0x10] sm:$0xff]  ;;  %2968 = vmatprep.subr.bf16.mxu0 %v3326_v3  ;;  %2520 = vmatprep.mubr.msk.f32.mxu0 %vm3327_vm0, %v3328_v8 }
   0x2   :  { %v41_v4 = vand.u32 4294901760, %v22_v0  ;;  %v44_v5 = vand.u32 4294901760, %v23_v1  ;;  %v25_v6 = vld [vmem:[%s3864_s1 + $0x18] sm:$0xff]  ;;  %v47_v7 = vand.u32 4294901760, %v24_v2  ;;  %v26_v10 = vld [vmem:[%s3864_s1 + $0x20] sm:$0xff]  ;;  %v27_v11 = vld [vmem:[%s3864_s1 + $0x28] sm:$0xff]  ;;  %2698 = vmatprep.subr.mxu1 %v3328_v8  ;;  %2700 = vmatprep.mubr.msk.f32.mxu1 %vm3327_vm0, %v3328_v8 }
   0x3   :  { %v50_v9 = vand.u32 4294901760, %v25_v6  ;;  %v53_v14 = vand.u32 4294901760, %v26_v10  ;;  %v56_v15 = vand.u32 4294901760, %v27_v11  ;;  %v28_v16 = vld [vmem:[%s3864_s1 + $0x30] sm:$0xff]  ;;  %v29_v17 = vld [vmem:[%s3864_s1 + $0x38] sm:$0xff] }
   0x4   :  { %v3384_v12 = vpack.c.bf16 %v44_v5, %v41_v4 }
   0x5   :  { %v3387_v13 = vpack.c.bf16 %v50_v9, %v47_v7 }
   0x6   :  { %2970 = vmatpush3.bf16.msra.mxu0 %v3384_v12 }
   0x7   :  { %2971 = vmatprep.subr.bf16.mxu0 %v3326_v3 }
   0x8   :  { %10 = vsyncpa [#allocation3], 0  ;;  %v3397_v18 = vpack.c.bf16 %v56_v15, %v53_v14  ;;  %v59_v19 = vand.u32 4294901760, %v28_v16  ;;  %v62_v20 = vand.u32 4294901760, %v29_v17  ;;  %v30_v21 = vld [vmem:[%s3864_s1 + $0x40] sm:$0xff]  ;;  %v31_v23 = vld [vmem:[%s3864_s1 + $0x48] sm:$0xff]  ;;  %v3435_v34 = vsub.f32 %v22_v0, %v41_v4 }
   0x9   :  { %v3405_v22 = vld [vmem:[%s3863_s0] sm:$0xff]  ;;  %v32_v24 = vld [vmem:[%s3864_s1 + $0x50] sm:$0xff]  ;;  %v33_v25 = vld [vmem:[%s3864_s1 + $0x58] sm:$0xff]  ;;  %v65_v27 = vand.u32 4294901760, %v30_v21  ;;  %v68_v33 = vand.u32 4294901760, %v31_v23  ;;  %v3437_v35 = vsub.f32 %v23_v1, %v44_v5  ;;  %v3444_v43 = vsub.f32 %v24_v2, %v47_v7  ;;  %s3329_s29 = smov [#allocation2]  }
   0xa   :  { %2973 = vmatpush3.bf16.msra.mxu0 %v3387_v13  ;;  %v34_v26 = vld [vmem:[%s3864_s1 + $0x60] sm:$0xff]  ;;  %v35_v28 = vld [vmem:[%s3864_s1 + $0x68] sm:$0xff]  ;;  %v36_v29 = vld [vmem:[%s3864_s1 + $0x70] sm:$0xff]  ;;  %v3430_v31 = vand.u32 4294901760, %v3405_v22  ;;  %v3433_v32 = vpack.c.bf16 %v62_v20, %v59_v19  ;;  %v71_v36 = vand.u32 4294901760, %v32_v24  ;;  %v74_v37 = vand.u32 4294901760, %v33_v25 }
   0xb   :  { %2974 = vmatprep.subr.bf16.mxu0 %v3326_v3  ;;  %v37_v30 = vld [vmem:[%s3864_s1 + $0x78] sm:$0xff]  ;;  %v77_v38 = vand.u32 4294901760, %v34_v26  ;;  %v80_v39 = vand.u32 4294901760, %v35_v28  ;;  %v83_v40 = vand.u32 4294901760, %v36_v29  ;;  %v3446_v44 = vsub.f32 %v25_v6, %v50_v9  ;;  %s2251_s30 = sshll.u32 %s3329_s29, 4  ;;  %s2252_s30 = int_to_ptr.vmem [resolvable:$true] %s2251_s30 }
   0xc   :  { %v86_v41 = vand.u32 4294901760, %v37_v30  ;;  %v3442_v42 = vsub.f32 %v3405_v22, %v3430_v31  ;;  %v3449_v45 = vpack.c.bf16 %v68_v33, %v65_v27  ;;  %v134_v46 = vand.u32 4294901760, %v3435_v34  ;;  %s3302_s6 = scalar_lea.vmem %s2252_s30, 128  ;;  %p3307_p1 = scmp.lt.s32.totalorder %s2252_s30, %s2252_s30 }
   0xd   :  { %v141_v47 = vand.u32 4294901760, %v3437_v35  ;;  %v3453_v48 = vsub.f32 %v26_v10, %v53_v14  ;;  %v3456_v49 = vpack.c.bf16 %v74_v37, %v71_v36  ;;  %v3458_v50 = vpack.c.bf16 %v80_v39, %v77_v38  ;;  %p3303_p0 = scmp.ne.s32.totalorder %s2252_s30, %s3302_s6  ;;  %p3308_p2 = scmp.lt.s32.totalorder %s3302_s6, %s3302_s6 }
   0xe   :  { %2976 = vmatpush3.bf16.msra.mxu0 %v3397_v18  ;;  %v3460_v51 = vpack.c.bf16 %v86_v41, %v83_v40  ;;  %v123_v52 = vand.u32 4294901760, %v3442_v42  ;;  %v148_v53 = vand.u32 4294901760, %v3444_v43  ;;  %v155_v54 = vand.u32 4294901760, %v3446_v44 }
   0xf   :  { %2977 = vmatprep.subr.bf16.mxu0 %v3326_v3  ;;  %v3465_v55 = vsub.f32 %v27_v11, %v56_v15  ;;  %v135_v56 = vsub.f32 %v3435_v34, %v134_v46  ;;  %v142_v57 = vsub.f32 %v3437_v35, %v141_v47  ;;  %v162_v58 = vand.u32 4294901760, %v3453_v48  ;;  %p3309_p3 = por %p3308_p2, %p3307_p1 }
  0x10   :  { %v3471_v59 = vsub.f32 %v28_v16, %v59_v19  ;;  %v3474_v60 = vsub.f32 %v29_v17, %v62_v20  ;;  %v3476_v61 = vsub.f32 %v30_v21, %v65_v27  ;;  %v3478_v62 = vsub.f32 %v31_v23, %v68_v33 }
  0x11   :  { %v3480_v63 = vsub.f32 %v32_v24, %v71_v36  ;;  %v3482_v0 = vsub.f32 %v33_v25, %v74_v37  ;;  %v3484_v1 = vsub.f32 %v34_v26, %v77_v38  ;;  %v3486_v2 = vsub.f32 %v35_v28, %v80_v39  ;;  %p3310_p4 = pnand %p3309_p3, %p3303_p0 }
  0x12   :  { %2979 = vmatpush3.bf16.msra.mxu0 %v3433_v32  ;;  %v3488_v4 = vsub.f32 %v36_v29, %v83_v40  ;;  %v124_v5 = vsub.f32 %v3442_v42, %v123_v52  ;;  %v149_v6 = vsub.f32 %v3444_v43, %v148_v53  ;;  %v169_v7 = vand.u32 4294901760, %v3465_v55 }
  0x13   :  { %2980 = vmatprep.subr.bf16.mxu0 %v3326_v3  ;;  %v3495_v9 = vsub.f32 %v37_v30, %v86_v41  ;;  %v136_v10 = vand.u32 4294901760, %v135_v56  ;;  %v143_v11 = vand.u32 4294901760, %v142_v57  ;;  %v156_v14 = vsub.f32 %v3446_v44, %v155_v54 }
  0x14   :  { %v176_v15 = vand.u32 4294901760, %v3471_v59  ;;  %v183_v16 = vand.u32 4294901760, %v3474_v60  ;;  %v190_v17 = vand.u32 4294901760, %v3476_v61  ;;  %v197_v19 = vand.u32 4294901760, %v3478_v62 }
  0x15   :  { %v204_v20 = vand.u32 4294901760, %v3480_v63  ;;  %v211_v21 = vand.u32 4294901760, %v3482_v0  ;;  %v218_v23 = vand.u32 4294901760, %v3484_v1  ;;  %v225_v24 = vand.u32 4294901760, %v3486_v2 }
  0x16   :  { %2982 = vmatpush3.bf16.msra.mxu0 %v3449_v45  ;;  %v232_v25 = vand.u32 4294901760, %v3488_v4  ;;  %v239_v26 = vand.u32 4294901760, %v3495_v9  ;;  %v3510_v27 = vpack.c.bf16 %v141_v47, %v134_v46  ;;  %v3512_v28 = vpack.c.bf16 %v155_v54, %v148_v53 }
  0x17   :  { %2983 = vmatprep.subr.bf16.mxu0 %v3326_v3  ;;  %v3514_v29 = vpack.c.bf16 %v169_v7, %v162_v58  ;;  %v3517_v30 = vpack.c.bf16 %v183_v16, %v176_v15  ;;  %v3519_v33 = vpack.c.bf16 %v197_v19, %v190_v17  ;;  %v3521_v36 = vpack.c.bf16 %v211_v21, %v204_v20 }
  0x18   :  { %v3523_v37 = vpack.c.bf16 %v225_v24, %v218_v23  ;;  %v3526_v38 = vpack.c.bf16 %v239_v26, %v232_v25  ;;  %v125_v39 = vand.u32 4294901760, %v124_v5  ;;  %v163_v40 = vsub.f32 %v3453_v48, %v162_v58 }
  0x19   :  { %v3530_v41 = vpack.c.bf16 %v143_v11, %v136_v10  ;;  %v150_v46 = vand.u32 4294901760, %v149_v6  ;;  %v157_v47 = vand.u32 4294901760, %v156_v14  ;;  %v170_v53 = vsub.f32 %v3465_v55, %v169_v7 }
  0x1a   :  { %2985 = vmatpush3.bf16.msra.mxu0 %v3456_v49  ;;  %v177_v54 = vsub.f32 %v3471_v59, %v176_v15  ;;  %v164_v57 = vand.u32 4294901760, %v163_v40  ;;  %v184_v58 = vsub.f32 %v3474_v60, %v183_v16  ;;  %v191_v11 = vsub.f32 %v3476_v61, %v190_v17 }
  0x1b   :  { %2986 = vmatprep.subr.bf16.mxu0 %v3326_v3  ;;  %v3536_v56 = vpack.c.bf16 %v157_v47, %v150_v46  ;;  %v171_v5 = vand.u32 4294901760, %v170_v53  ;;  %v198_v14 = vsub.f32 %v3478_v62, %v197_v19  ;;  %v205_v15 = vsub.f32 %v3480_v63, %v204_v20 }
  0x1c   :  { %v178_v6 = vand.u32 4294901760, %v177_v54  ;;  %v185_v10 = vand.u32 4294901760, %v184_v58  ;;  %v212_v46 = vsub.f32 %v3482_v0, %v211_v21  ;;  %v219_v47 = vsub.f32 %v3484_v1, %v218_v23 }
  0x1d   :  { %v3543_v7 = vpack.c.bf16 %v171_v5, %v164_v57  ;;  %v199_v40 = vand.u32 4294901760, %v198_v14  ;;  %v206_v19 = vand.u32 4294901760, %v205_v15  ;;  %v226_v20 = vsub.f32 %v3486_v2, %v225_v24 }
  0x1e   :  { %2988 = vmatpush3.bf16.msra.mxu0 %v3458_v50  ;;  %v3550_v16 = vpack.c.bf16 %v185_v10, %v178_v6  ;;  %v213_v53 = vand.u32 4294901760, %v212_v46  ;;  %v233_v54 = vsub.f32 %v3488_v4, %v232_v25  ;;  %v220_v21 = vand.u32 4294901760, %v219_v47 }
  0x1f   :  { %2989 = vmatprep.subr.bf16.mxu0 %v3326_v3  ;;  %v227_v5 = vand.u32 4294901760, %v226_v20  ;;  %v240_v23 = vsub.f32 %v3495_v9, %v239_v26  ;;  %v3577_v26 = vpack.c.bf16 %v3437_v35, %v3435_v34  ;;  %v3584_v10 = vpack.c.bf16 %v3446_v44, %v3444_v43 }
  0x20   :  { %v3562_v57 = vpack.c.bf16 %v213_v53, %v206_v19  ;;  %v234_v6 = vand.u32 4294901760, %v233_v54  ;;  %v3592_v34 = vpack.c.bf16 %v3465_v55, %v3453_v48  ;;  %v3598_v35 = vpack.c.bf16 %v3474_v60, %v3471_v59 }
  0x21   :  { %v3567_v58 = vpack.c.bf16 %v227_v5, %v220_v21  ;;  %v241_v24 = vand.u32 4294901760, %v240_v23  ;;  %v3604_v43 = vpack.c.bf16 %v3478_v62, %v3476_v61  ;;  %v3610_v44 = vpack.c.bf16 %v3482_v0, %v3480_v63 }
  0x22   :  { %2991 = vmatpush3.bf16.msra.mxu0 %v3460_v51  ;;  %v3616_v48 = vpack.c.bf16 %v3486_v2, %v3484_v1  ;;  %v3622_v55 = vpack.c.bf16 %v3495_v9, %v3488_v4  ;;  %vm686_vm1 = vcmask 1043456   ;;  %vm682_vm2 = vcmask 31744  }
  0x23   :  { %2992 = vmatprep.subr.bf16.mxu0 %v3326_v3  ;;  %v3571_v25 = vpack.c.bf16 %v241_v24, %v234_v6 }
  0x25   :  { %2521 = vmatmul.mubr.f32.vlgmr.msra.gmra.mrb[0].mxu0 %v125_v39  ;;  %v192_v39 = vand.u32 4294901760, %v191_v11 }
  0x26   :  { %2994 = vmatpush3.bf16.msra.mxu0 %v3530_v41  ;;  %2555 = vmatprep.mubr.msk.f32.mxu0 %vm3327_vm0, %v3328_v8 }
  0x27   :  { %2995 = vmatprep.subr.bf16.mxu0 %v3326_v3  ;;  %v3556_v17 = vpack.c.bf16 %v199_v40, %v192_v39 }
  0x2a   :  { %2997 = vmatpush3.bf16.msra.mxu0 %v3536_v56 }
  0x2b   :  { %2998 = vmatprep.subr.bf16.mxu0 %v3326_v3 }
  0x2e   :  { %3000 = vmatpush3.bf16.msra.mxu0 %v3543_v7 }
  0x2f   :  { %3001 = vmatprep.subr.bf16.mxu0 %v3326_v3 }
  0x32   :  { %3003 = vmatpush3.bf16.msra.mxu0 %v3550_v16 }
  0x33   :  { %3004 = vmatprep.subr.bf16.mxu0 %v3326_v3 }
  0x36   :  { %3006 = vmatpush3.bf16.msra.mxu0 %v3556_v17 }
  0x37   :  { %3007 = vmatprep.subr.bf16.mxu0 %v3326_v3 }
  0x3a   :  { %3009 = vmatpush3.bf16.msra.mxu0 %v3562_v57 }
  0x3b   :  { %3010 = vmatprep.subr.bf16.mxu0 %v3326_v3 }
  0x3e   :  { %3012 = vmatpush3.bf16.msra.mxu0 %v3567_v58 }
  0x3f   :  { %3013 = vmatprep.subr.bf16.mxu0 %v3326_v3 }
  0x42   :  { %3015 = vmatpush3.bf16.msra.mxu0 %v3571_v25 }
  0x43   :  { %3016 = vmatprep.subr.bf16.mxu0 %v3326_v3 }
  0x45   :  { %2556 = vmatmul.mubr.f32.vlgmr.msra.gmra.mrb[0].mxu0 %v3430_v31 }
  0x46   :  { %3018 = vmatpush3.bf16.msra.mxu0 %v3577_v26  ;;  %2590 = vmatprep.mubr.msk.f32.mxu0 %vm3327_vm0, %v3328_v8 }
  0x47   :  { %3019 = vmatprep.subr.bf16.mxu0 %v3326_v3 }
  0x4a   :  { %3021 = vmatpush3.bf16.msra.mxu0 %v3584_v10 }
  0x4b   :  { %3022 = vmatprep.subr.bf16.mxu0 %v3326_v3 }
  0x4e   :  { %3024 = vmatpush3.bf16.msra.mxu0 %v3592_v34 }
  0x4f   :  { %3025 = vmatprep.subr.bf16.mxu0 %v3326_v3 }
  0x52   :  { %3027 = vmatpush3.bf16.msra.mxu0 %v3598_v35 }
  0x53   :  { %3028 = vmatprep.subr.bf16.mxu0 %v3326_v3 }
  0x56   :  { %3030 = vmatpush3.bf16.msra.mxu0 %v3604_v43 }
  0x57   :  { %3031 = vmatprep.subr.bf16.mxu0 %v3326_v3 }
  0x5a   :  { %3033 = vmatpush3.bf16.msra.mxu0 %v3610_v44 }
  0x5b   :  { %3034 = vmatprep.subr.bf16.mxu0 %v3326_v3 }
  0x5e   :  { %3036 = vmatpush3.bf16.msra.mxu0 %v3616_v48 }
  0x5f   :  { %3037 = vmatprep.subr.bf16.mxu0 %v3326_v3 }
  0x62   :  { %3039 = vmatpush3.bf16.msra.mxu0 %v3622_v55 }
  0x63   :  { %3040 = vmatprep.subr.bf16.mxu0 %v3326_v3 }
  0x65   :  { %2591 = vmatmul.mubr.f32.vlgmr.msra.gmra.mrb[0].mxu0 %v3442_v42  ;;  %v38_v42 = vld [vmem:[%s3865_s2] sm:$0xf] }
  0x66   :  { %3042 = vmatpush3.bf16.msra.mxu0 %v3384_v12  ;;  %2625 = vmatprep.mubr.msk.f32.mxu0 %vm3327_vm0, %v3328_v8 }
  0x67   :  { %3043 = vmatprep.subr.bf16.mxu0 %v3326_v3 }
  0x6a   :  { %3045 = vmatpush3.bf16.msra.mxu0 %v3387_v13 }
  0x6b   :  { %3046 = vmatprep.subr.bf16.mxu0 %v3326_v3 }
  0x6e   :  { %3048 = vmatpush3.bf16.msra.mxu0 %v3397_v18 }
  0x6f   :  { %3049 = vmatprep.subr.bf16.mxu0 %v3326_v3 }
  0x72   :  { %3051 = vmatpush3.bf16.msra.mxu0 %v3433_v32 }
  0x73   :  { %3052 = vmatprep.subr.bf16.mxu0 %v3326_v3 }
  0x76   :  { %3054 = vmatpush3.bf16.msra.mxu0 %v3449_v45 }
  0x77   :  { %3055 = vmatprep.subr.bf16.mxu0 %v3326_v3 }
  0x7a   :  { %3057 = vmatpush3.bf16.msra.mxu0 %v3456_v49 }
  0x7b   :  { %3058 = vmatprep.subr.bf16.mxu0 %v3326_v3 }
  0x7e   :  { %3060 = vmatpush3.bf16.msra.mxu0 %v3458_v50 }
  0x7f   :  { %3061 = vmatprep.subr.bf16.mxu0 %v3326_v3 }
  0x82   :  { %3063 = vmatpush3.bf16.msra.mxu0 %v3460_v51 }
  0x83   :  { %3064 = vmatprep.subr.bf16.mxu0 %v3326_v3 }
  0x85   :  { %2626 = vmatmul.mubr.f32.vlgmr.msra.gmra.mrb[0].mxu0 %v123_v52  ;;  %v688_v52 = vsel %vm686_vm1, %v38_v42, 0 }
  0x86   :  { %3066 = vmatpush3.bf16.msra.mxu0 %v3510_v27  ;;  %2660 = vmatprep.mubr.msk.f32.mxu0 %vm3327_vm0, %v3328_v8  ;;  %v691_v59 = vand.u32 4294901760, %v688_v52 }
  0x87   :  { %3067 = vmatprep.subr.bf16.mxu0 %v3326_v3 }
  0x88   :  { %2699 = vmatpush3.msra.mxu1 %v691_v59  ;;  %v768_v60 = vsub.f32 %v688_v52, %v691_v59 }
  0x89   :  { %2703 = vmatprep.subr.mxu1 %v3328_v8 }
  0x8a   :  { %3069 = vmatpush3.bf16.msra.mxu0 %v3512_v28  ;;  %v769_v0 = vand.u32 4294901760, %v768_v60 }
  0x8b   :  { %3070 = vmatprep.subr.bf16.mxu0 %v3326_v3 }
  0x8c   :  { %v770_v4 = vsub.f32 %v768_v60, %v769_v0 }
  0x8e   :  { %3072 = vmatpush3.bf16.msra.mxu0 %v3514_v29  ;;  %v771_v14 = vand.u32 4294901760, %v770_v4 }
  0x8f   :  { %3073 = vmatprep.subr.bf16.mxu0 %v3326_v3 }
  0x92   :  { %3075 = vmatpush3.bf16.msra.mxu0 %v3517_v30 }
  0x93   :  { %3076 = vmatprep.subr.bf16.mxu0 %v3326_v3 }
  0x96   :  { %3078 = vmatpush3.bf16.msra.mxu0 %v3519_v33 }
  0x97   :  { %3079 = vmatprep.subr.bf16.mxu0 %v3326_v3 }
  0x9a   :  { %3081 = vmatpush3.bf16.msra.mxu0 %v3521_v36 }
  0x9b   :  { %3082 = vmatprep.subr.bf16.mxu0 %v3326_v3 }
  0x9e   :  { %3084 = vmatpush3.bf16.msra.mxu0 %v3523_v37 }
  0x9f   :  { %3085 = vmatprep.subr.bf16.mxu0 %v3326_v3 }
  0xa2   :  { %3087 = vmatpush3.bf16.msra.mxu0 %v3526_v38 }
  0xa3   :  { %3088 = vmatprep.subr.bf16.mxu0 %v3326_v3 }
  0xa5   :  { %2661 = vmatmul.mubr.f32.vlgmr.msra.gmra.mrb[0].mxu0 %v3430_v31 }
  0xa6   :  { %3090 = vmatpush3.bf16.msra.mxu0 %v3384_v12  ;;  %2695 = vmatprep.mubr.msk.f32.mxu0 %vm3327_vm0, %v3328_v8 }
  0xa7   :  { %3091 = vmatprep.subr.bf16.mxu0 %v3326_v3 }
  0xaa   :  { %3093 = vmatpush3.bf16.msra.mxu0 %v3387_v13 }
  0xab   :  { %3094 = vmatprep.subr.bf16.mxu0 %v3326_v3 }
  0xae   :  { %3096 = vmatpush3.bf16.msra.mxu0 %v3397_v18 }
  0xaf   :  { %3097 = vmatprep.subr.bf16.mxu0 %v3326_v3 }
  0xb2   :  { %3099 = vmatpush3.bf16.msra.mxu0 %v3433_v32 }
  0xb3   :  { %3100 = vmatprep.subr.bf16.mxu0 %v3326_v3 }
  0xb6   :  { %3102 = vmatpush3.bf16.msra.mxu0 %v3449_v45 }
  0xb7   :  { %3103 = vmatprep.subr.bf16.mxu0 %v3326_v3 }
  0xba   :  { %3105 = vmatpush3.bf16.msra.mxu0 %v3456_v49 }
  0xbb   :  { %3106 = vmatprep.subr.bf16.mxu0 %v3326_v3 }
  0xbe   :  { %3108 = vmatpush3.bf16.msra.mxu0 %v3458_v50 }
  0xbf   :  { %3109 = vmatprep.subr.bf16.mxu0 %v3326_v3 }
  0xc2   :  { %3111 = vmatpush3.bf16.msra.mxu0 %v3460_v51 }
  0xc3   :  { %2938 = vmatprep.subr.mxu0 %v3328_v8 }
  0xc5   :  { %2696 = vmatmul.mubr.f32.vlgmr.msra.gmra.mrb[0].mxu0 %v3430_v31 }
  0xc6   :  { %2940 = vmatprep.mubr.msk.f32.mxu0 %vm3327_vm0, %v3328_v8 }
 0x198   :  { %v677_v61 = vpop.f32.mrb[0].mxu0 }
 0x199   :  { %v681_v62 = vmul.f32 0.03125, %v677_v61  ;;  %v2697_v63 = vpop.f32.mrb[1].mxu0 }
 0x19b   :  { %v684_v31 = vsel %vm682_vm2, %v681_v62, 0 }
 0x19c   :  { %v756_v1 = vand.u32 4294901760, %v684_v31 }
 0x19e   :  { %v757_v2 = vsub.f32 %v684_v31, %v756_v1 }
 0x1a0   :  { %v758_v9 = vand.u32 4294901760, %v757_v2 }
 0x1a2   :  { %v759_v11 = vsub.f32 %v757_v2, %v758_v9 }
 0x1a4   :  { %v760_v15 = vand.u32 4294901760, %v759_v11 }
 0x1a6   :  { %2701 = vmatmul.mubr.f32.vlgmr.msra.gmra.mrb[0].mxu1 %v760_v15 }
 0x1a7   :  { %2704 = vmatpush3.msra.mxu1 %v771_v14  ;;  %2705 = vmatprep.mubr.msk.f32.mxu1 %vm3327_vm0, %v3328_v8 }
 0x1a8   :  { %2708 = vmatprep.subr.mxu1 %v3328_v8 }
 0x1ae   :  { %2706 = vmatmul.mubr.f32.vlgmr.msra.gmra.mrb[0].mxu1 %v756_v1 }
 0x1af   :  { %2709 = vmatpush3.msra.mxu1 %v768_v60  ;;  %2710 = vmatprep.mubr.msk.f32.mxu1 %vm3327_vm0, %v3328_v8 }
 0x1b0   :  { %2713 = vmatprep.subr.mxu1 %v3328_v8 }
 0x1b6   :  { %2711 = vmatmul.mubr.f32.vlgmr.msra.gmra.mrb[0].mxu1 %v757_v2 }
 0x1b7   :  { %2714 = vmatpush3.msra.mxu1 %v691_v59  ;;  %2715 = vmatprep.mubr.msk.f32.mxu1 %vm3327_vm0, %v3328_v8 }
 0x1b8   :  { %2718 = vmatprep.subr.mxu1 %v3328_v8 }
 0x1be   :  { %2716 = vmatmul.mubr.f32.vlgmr.msra.gmra.mrb[0].mxu1 %v758_v9 }
 0x1bf   :  { %2719 = vmatpush3.msra.mxu1 %v769_v0  ;;  %2720 = vmatprep.mubr.msk.f32.mxu1 %vm3327_vm0, %v3328_v8 }
 0x1c0   :  { %2723 = vmatprep.subr.mxu1 %v3328_v8 }
 0x1c6   :  { %2721 = vmatmul.mubr.f32.vlgmr.msra.gmra.mrb[0].mxu1 %v756_v1 }
 0x1c7   :  { %2724 = vmatpush3.msra.mxu1 %v691_v59  ;;  %2725 = vmatprep.mubr.msk.f32.mxu1 %vm3327_vm0, %v3328_v8 }
 0x1c8   :  { %3112 = vmatprep.subr.bf16.mxu1 %v3326_v3 }
 0x1ce   :  { %2726 = vmatmul.mubr.f32.vlgmr.msra.gmra.mrb[0].mxu1 %v756_v1 }
 0x1cf   :  { %3114 = vmatpush3.bf16.msra.mxu1 %v3384_v12  ;;  %2760 = vmatprep.mubr.msk.f32.mxu1 %vm3327_vm0, %v3328_v8 }
 0x1d0   :  { %3115 = vmatprep.subr.bf16.mxu1 %v3326_v3 }
 0x1d3   :  { %3117 = vmatpush3.bf16.msra.mxu1 %v3387_v13 }
 0x1d4   :  { %3118 = vmatprep.subr.bf16.mxu1 %v3326_v3 }
 0x1d7   :  { %3120 = vmatpush3.bf16.msra.mxu1 %v3397_v18 }
 0x1d8   :  { %3121 = vmatprep.subr.bf16.mxu1 %v3326_v3 }
 0x1db   :  { %3123 = vmatpush3.bf16.msra.mxu1 %v3433_v32 }
 0x1dc   :  { %3124 = vmatprep.subr.bf16.mxu1 %v3326_v3 }
 0x1df   :  { %3126 = vmatpush3.bf16.msra.mxu1 %v3449_v45 }
 0x1e0   :  { %3127 = vmatprep.subr.bf16.mxu1 %v3326_v3 }
 0x1e3   :  { %3129 = vmatpush3.bf16.msra.mxu1 %v3456_v49 }
 0x1e4   :  { %3130 = vmatprep.subr.bf16.mxu1 %v3326_v3 }
 0x1e7   :  { %3132 = vmatpush3.bf16.msra.mxu1 %v3458_v50 }
 0x1e8   :  { %3133 = vmatprep.subr.bf16.mxu1 %v3326_v3 }
 0x1eb   :  { %3135 = vmatpush3.bf16.msra.mxu1 %v3460_v51 }
 0x1ec   :  { %3136 = vmatprep.subr.bf16.mxu1 %v3326_v3 }
 0x2a1   :  { %v1132_v39 = vpop.f32.mrb[0].mxu1 }
 0x2a2   :  { %v3728_v40 = vsub.f32 %v3405_v22, %v1132_v39  ;;  %v2727_v46 = vpop.f32.mrb[1].mxu1 }
 0x2a4   :  { %v1137_v47 = vmul.f32 %v3728_v40, %v3728_v40 }
 0x2a6   :  { %v3732_v19 = vand.u32 4294901760, %v1137_v47 }
 0x2a8   :  { %v1220_v53 = vsub.f32 %v1137_v47, %v3732_v19 }
 0x2aa   :  { %v1221_v20 = vand.u32 4294901760, %v1220_v53 }
 0x2ac   :  { %v1222_v54 = vsub.f32 %v1220_v53, %v1221_v20 }
 0x2ae   :  { %v1223_v21 = vand.u32 4294901760, %v1222_v54 }
 0x2b0   :  { %2761 = vmatmul.mubr.f32.vlgmr.msra.gmra.mrb[2].mxu1 %v1223_v21 }
 0x2b1   :  { %3138 = vmatpush3.bf16.msra.mxu1 %v3530_v41  ;;  %2795 = vmatprep.mubr.msk.f32.mxu1 %vm3327_vm0, %v3328_v8 }
 0x2b2   :  { %3139 = vmatprep.subr.bf16.mxu1 %v3326_v3 }
 0x2b5   :  { %3141 = vmatpush3.bf16.msra.mxu1 %v3536_v56 }
 0x2b6   :  { %3142 = vmatprep.subr.bf16.mxu1 %v3326_v3 }
 0x2b9   :  { %3144 = vmatpush3.bf16.msra.mxu1 %v3543_v7  ;;  %v2259_v7 = vld [vmem:[%s3867_s4] ss:$0 sm:$0xff] }
 0x2ba   :  { %3145 = vmatprep.subr.bf16.mxu1 %v3326_v3 }
 0x2bd   :  { %3147 = vmatpush3.bf16.msra.mxu1 %v3550_v16 }
 0x2be   :  { %3148 = vmatprep.subr.bf16.mxu1 %v3326_v3 }
 0x2c1   :  { %3150 = vmatpush3.bf16.msra.mxu1 %v3556_v17 }
 0x2c2   :  { %3151 = vmatprep.subr.bf16.mxu1 %v3326_v3 }
 0x2c5   :  { %3153 = vmatpush3.bf16.msra.mxu1 %v3562_v57 }
 0x2c6   :  { %3154 = vmatprep.subr.bf16.mxu1 %v3326_v3 }
 0x2c9   :  { %3156 = vmatpush3.bf16.msra.mxu1 %v3567_v58 }
 0x2ca   :  { %3157 = vmatprep.subr.bf16.mxu1 %v3326_v3 }
 0x2cd   :  { %3159 = vmatpush3.bf16.msra.mxu1 %v3571_v25 }
 0x2ce   :  { %3160 = vmatprep.subr.bf16.mxu1 %v3326_v3 }
 0x2d0   :  { %2796 = vmatmul.mubr.f32.vlgmr.msra.gmra.mrb[2].mxu1 %v3732_v19 }
 0x2d1   :  { %3162 = vmatpush3.bf16.msra.mxu1 %v3577_v26  ;;  %2830 = vmatprep.mubr.msk.f32.mxu1 %vm3327_vm0, %v3328_v8 }
 0x2d2   :  { %3163 = vmatprep.subr.bf16.mxu1 %v3326_v3 }
 0x2d5   :  { %3165 = vmatpush3.bf16.msra.mxu1 %v3584_v10 }
 0x2d6   :  { %3166 = vmatprep.subr.bf16.mxu1 %v3326_v3 }
 0x2d9   :  { %3168 = vmatpush3.bf16.msra.mxu1 %v3592_v34 }
 0x2da   :  { %3169 = vmatprep.subr.bf16.mxu1 %v3326_v3 }
 0x2dd   :  { %3171 = vmatpush3.bf16.msra.mxu1 %v3598_v35 }
 0x2de   :  { %3172 = vmatprep.subr.bf16.mxu1 %v3326_v3 }
 0x2e1   :  { %3174 = vmatpush3.bf16.msra.mxu1 %v3604_v43 }
 0x2e2   :  { %3175 = vmatprep.subr.bf16.mxu1 %v3326_v3 }
 0x2e5   :  { %3177 = vmatpush3.bf16.msra.mxu1 %v3610_v44 }
 0x2e6   :  { %3178 = vmatprep.subr.bf16.mxu1 %v3326_v3 }
 0x2e9   :  { %3180 = vmatpush3.bf16.msra.mxu1 %v3616_v48 }
 0x2ea   :  { %3181 = vmatprep.subr.bf16.mxu1 %v3326_v3 }
 0x2ed   :  { %3183 = vmatpush3.bf16.msra.mxu1 %v3622_v55 }
 0x2ee   :  { %3184 = vmatprep.subr.bf16.mxu1 %v3326_v3 }
 0x2f0   :  { %2831 = vmatmul.mubr.f32.vlgmr.msra.gmra.mrb[2].mxu1 %v1220_v53 }
 0x2f1   :  { %3186 = vmatpush3.bf16.msra.mxu1 %v3384_v12  ;;  %2865 = vmatprep.mubr.msk.f32.mxu1 %vm3327_vm0, %v3328_v8 }
 0x2f2   :  { %3187 = vmatprep.subr.bf16.mxu1 %v3326_v3 }
 0x2f5   :  { %3189 = vmatpush3.bf16.msra.mxu1 %v3387_v13 }
 0x2f6   :  { %3190 = vmatprep.subr.bf16.mxu1 %v3326_v3 }
 0x2f9   :  { %3192 = vmatpush3.bf16.msra.mxu1 %v3397_v18 }
 0x2fa   :  { %3193 = vmatprep.subr.bf16.mxu1 %v3326_v3 }
 0x2fd   :  { %3195 = vmatpush3.bf16.msra.mxu1 %v3433_v32 }
 0x2fe   :  { %3196 = vmatprep.subr.bf16.mxu1 %v3326_v3 }
 0x301   :  { %3198 = vmatpush3.bf16.msra.mxu1 %v3449_v45 }
 0x302   :  { %3199 = vmatprep.subr.bf16.mxu1 %v3326_v3 }
 0x305   :  { %3201 = vmatpush3.bf16.msra.mxu1 %v3456_v49 }
 0x306   :  { %3202 = vmatprep.subr.bf16.mxu1 %v3326_v3 }
 0x309   :  { %3204 = vmatpush3.bf16.msra.mxu1 %v3458_v50 }
 0x30a   :  { %3205 = vmatprep.subr.bf16.mxu1 %v3326_v3 }
 0x30d   :  { %3207 = vmatpush3.bf16.msra.mxu1 %v3460_v51 }
 0x30e   :  { %3208 = vmatprep.subr.bf16.mxu1 %v3326_v3 }
 0x310   :  { %2866 = vmatmul.mubr.f32.vlgmr.msra.gmra.mrb[2].mxu1 %v1221_v20 }
 0x311   :  { %3210 = vmatpush3.bf16.msra.mxu1 %v3510_v27  ;;  %2900 = vmatprep.mubr.msk.f32.mxu1 %vm3327_vm0, %v3328_v8 }
 0x312   :  { %3211 = vmatprep.subr.bf16.mxu1 %v3326_v3 }
 0x315   :  { %3213 = vmatpush3.bf16.msra.mxu1 %v3512_v28 }
 0x316   :  { %3214 = vmatprep.subr.bf16.mxu1 %v3326_v3 }
 0x319   :  { %3216 = vmatpush3.bf16.msra.mxu1 %v3514_v29 }
 0x31a   :  { %3217 = vmatprep.subr.bf16.mxu1 %v3326_v3 }
 0x31d   :  { %3219 = vmatpush3.bf16.msra.mxu1 %v3517_v30 }
 0x31e   :  { %3220 = vmatprep.subr.bf16.mxu1 %v3326_v3 }
 0x321   :  { %3222 = vmatpush3.bf16.msra.mxu1 %v3519_v33 }
 0x322   :  { %3223 = vmatprep.subr.bf16.mxu1 %v3326_v3 }
 0x325   :  { %3225 = vmatpush3.bf16.msra.mxu1 %v3521_v36 }
 0x326   :  { %3226 = vmatprep.subr.bf16.mxu1 %v3326_v3 }
 0x329   :  { %3228 = vmatpush3.bf16.msra.mxu1 %v3523_v37 }
 0x32a   :  { %3229 = vmatprep.subr.bf16.mxu1 %v3326_v3 }
 0x32d   :  { %3231 = vmatpush3.bf16.msra.mxu1 %v3526_v38 }
 0x32e   :  { %3232 = vmatprep.subr.bf16.mxu1 %v3326_v3 }
 0x330   :  { %2901 = vmatmul.mubr.f32.vlgmr.msra.gmra.mrb[2].mxu1 %v3732_v19 }
 0x331   :  { %3234 = vmatpush3.bf16.msra.mxu1 %v3384_v12  ;;  %2935 = vmatprep.mubr.msk.f32.mxu1 %vm3327_vm0, %v3328_v8  ;;  %v39_v12 = vld [vmem:[%s3866_s3] sm:$0xf] }
 0x332   :  { %3235 = vmatprep.subr.bf16.mxu1 %v3326_v3 }
 0x335   :  { %3237 = vmatpush3.bf16.msra.mxu1 %v3387_v13  ;;  %v1787_v13 = vsel %vm686_vm1, %v39_v12, 0 }
 0x336   :  { %3238 = vmatprep.subr.bf16.mxu1 %v3326_v3 }
 0x339   :  { %3240 = vmatpush3.bf16.msra.mxu1 %v3397_v18  ;;  %v1790_v18 = vand.u32 4294901760, %v1787_v13 }
 0x33a   :  { %3241 = vmatprep.subr.bf16.mxu1 %v3326_v3 }
 0x33b   :  { %2939 = vmatpush3.msra.mxu0 %v1790_v18 }
 0x33c   :  { %2943 = vmatprep.subr.mxu0 %v3328_v8 }
 0x33d   :  { %3243 = vmatpush3.bf16.msra.mxu1 %v3433_v32 }
 0x33e   :  { %3244 = vmatprep.subr.bf16.mxu1 %v3326_v3 }
 0x341   :  { %3246 = vmatpush3.bf16.msra.mxu1 %v3449_v45 }
 0x342   :  { %3247 = vmatprep.subr.bf16.mxu1 %v3326_v3 }
 0x345   :  { %3249 = vmatpush3.bf16.msra.mxu1 %v3456_v49 }
 0x346   :  { %3250 = vmatprep.subr.bf16.mxu1 %v3326_v3 }
 0x349   :  { %3252 = vmatpush3.bf16.msra.mxu1 %v3458_v50 }
 0x34a   :  { %3253 = vmatprep.subr.bf16.mxu1 %v3326_v3  ;;  %v1867_v3 = vsub.f32 %v1787_v13, %v1790_v18 }
 0x34c   :  { %v1868_v28 = vand.u32 4294901760, %v1867_v3 }
 0x34d   :  { %3255 = vmatpush3.bf16.msra.mxu1 %v3460_v51 }
 0x34e   :  { %v1869_v33 = vsub.f32 %v1867_v3, %v1868_v28 }
 0x350   :  { %2936 = vmatmul.mubr.f32.vlgmr.msra.gmra.mrb[2].mxu1 %v3732_v19  ;;  %v1870_v38 = vand.u32 4294901760, %v1869_v33 }
 0x423   :  { %v1775_v22 = vpop.f32.mrb[2].mxu1 }
 0x424   :  { %v1779_v32 = vmul.f32 0.03125, %v1775_v22  ;;  %v2937_v45 = vpop.f32.mrb[3].mxu1 }
 0x426   :  { %v1780_v49 = vmax.f32 %v1779_v32, 0.0 }
 0x428   :  { %v1781_v50 = vadd.f32 1e-05, %v1780_v49 }
 0x42a   :  { %3300 = vrsqrt.f32 %v1781_v50 }
 0x434   :  { %v3301_v51 = vpop.eup %3300 }
 0x435   :  { %v1784_v27 = vsel %vm682_vm2, %v3301_v51, 0 }
 0x436   :  { %v1855_v29 = vand.u32 4294901760, %v1784_v27 }
 0x438   :  { %v1856_v30 = vsub.f32 %v1784_v27, %v1855_v29 }
 0x43a   :  { %v1857_v36 = vand.u32 4294901760, %v1856_v30 }
 0x43c   :  { %v1858_v37 = vsub.f32 %v1856_v30, %v1857_v36 }
 0x43e   :  { %v1859_v41 = vand.u32 4294901760, %v1858_v37 }
 0x440   :  { %2941 = vmatmul.mubr.f32.vlgmr.msra.gmra.mrb[2].mxu0 %v1859_v41 }
 0x441   :  { %2944 = vmatpush3.msra.mxu0 %v1870_v38  ;;  %2945 = vmatprep.mubr.msk.f32.mxu0 %vm3327_vm0, %v3328_v8 }
 0x442   :  { %2948 = vmatprep.subr.mxu0 %v3328_v8 }
 0x448   :  { %2946 = vmatmul.mubr.f32.vlgmr.msra.gmra.mrb[2].mxu0 %v1855_v29 }
 0x449   :  { %2949 = vmatpush3.msra.mxu0 %v1867_v3  ;;  %2950 = vmatprep.mubr.msk.f32.mxu0 %vm3327_vm0, %v3328_v8 }
 0x44a   :  { %2953 = vmatprep.subr.mxu0 %v3328_v8 }
 0x450   :  { %2951 = vmatmul.mubr.f32.vlgmr.msra.gmra.mrb[2].mxu0 %v1856_v30 }
 0x451   :  { %2954 = vmatpush3.msra.mxu0 %v1790_v18  ;;  %2955 = vmatprep.mubr.msk.f32.mxu0 %vm3327_vm0, %v3328_v8 }
 0x452   :  { %2958 = vmatprep.subr.mxu0 %v3328_v8 }
 0x458   :  { %2956 = vmatmul.mubr.f32.vlgmr.msra.gmra.mrb[2].mxu0 %v1857_v36 }
 0x459   :  { %2959 = vmatpush3.msra.mxu0 %v1868_v28  ;;  %2960 = vmatprep.mubr.msk.f32.mxu0 %vm3327_vm0, %v3328_v8 }
 0x45a   :  { %2963 = vmatprep.subr.mxu0 %v3328_v8 }
 0x460   :  { %2961 = vmatmul.mubr.f32.vlgmr.msra.gmra.mrb[2].mxu0 %v1855_v29 }
 0x461   :  { %2964 = vmatpush3.msra.mxu0 %v1790_v18  ;;  %2965 = vmatprep.mubr.msk.f32.mxu0 %vm3327_vm0, %v3328_v8 }
 0x468   :  { %2966 = vmatmul.mubr.f32.vlgmr.msra.gmra.mrb[2].mxu0 %v1855_v29 }
 0x53b   :  { %v2231_v56 = vpop.f32.mrb[2].mxu0 }
 0x53c   :  { %v2235_v16 = vmul.f32 %v2231_v56, %v3728_v40  ;;  %v2967_v17 = vpop.f32.mrb[3].mxu0 }
 0x53e   :  { %v2243_v57 = vadd.f32 %v2259_v7, %v2235_v16 }
 0x540   :  { %2244 = vst [vmem:[#allocation2] sm:$0xff] %v2243_v57 }
 0x541   :  { %3313 = shalt.err (!%p3310_p4)
}
 0x542   :  { %s3314_s9 = scalar_lea.hbm %s3868_s5, 128 }
 0x543   :  { %p3315_p5 = scmp.ne.s32.totalorder %s3868_s5, %s3314_s9  ;;  %p3318_p6 = scmp.lt.u32.totalorder %s3314_s9, %s3868_s5 }
 0x545   :  { %p3320_p7 = pnand %p3318_p6, %p3315_p5 }
 0x547   :  { %3323 = shalt.err (!%p3320_p7)
}
 0x548   :  { %2254 = dma.vmem_to_hbm [thread:$0]  %s2252_s30, 128, %s3868_s5, [#allocation3]  }
 0x549   :  { %3324 = dma.done.wait [#allocation3], 128  }
 0x54a   :  { %3325 = vsyncadd [#allocation3], 4294967168 }
 0x54b   :  { %2258 = vsyncpa [#allocation3], 1 }

</bundles_post_ra>
